<compile_context>
chip_gen: v6e
topology: v6e:2x2x1
jax: 0.10.0
libtpu: 0.0.40
codegen_flags: <defaults>
</compile_context>

<pallas_src>
import functools

import numpy as np
import jax
import jax.numpy as jnp
from jax import lax
from jax.experimental import pallas as pl
from jax.experimental.pallas import tpu as pltpu


def _round_up(x, m):
    return ((x + m - 1) // m) * m


def _nearest_indices(out_len, in_len):
    """Source row per output row for F.interpolate(mode='nearest').

    PyTorch 'nearest': src = floor(dst * in_len / out_len), clamped.
    TODO(synk): if the model switches to 'nearest-exact', add the +0.5 offset.
    """
    idx = (np.arange(out_len, dtype=np.int64) * in_len) // out_len
    return np.minimum(idx, in_len - 1).astype(np.int32)


_HIGHEST = jax.lax.Precision.HIGHEST


# ---------------------------------------------------------------------------
# Fused kernel: nearest-neighbour gather + linear projection in one pass.
# Grid: (B, n_q_tiles).  kv block index depends only on the batch axis, so the
# per-batch slab is DMA'd once per batch and reused across all output tiles;
# weight / bias stay resident across the whole grid.  The per-tile source rows
# form a contiguous window; its (8-aligned) start lives in SMEM via scalar
# prefetch and the window is sliced out of the resident slab.
# ---------------------------------------------------------------------------
def _fused_additor_kernel(wstart_ref, idx_ref, kv_ref, w_ref, b_ref, o_ref,
                          *, win_rows, full_window, project_first):
    # wstart_ref: (n_tiles,) int32 in SMEM   window start per output tile
    # idx_ref:    (TM, 1)    int32           window-local source row per out row
    # kv_ref:     (S_kv_pad, C)              per-batch resident kv slab
    # w_ref:      (C, C)                     pre-transposed: y = x @ w
    # b_ref:      (1, C)     float32
    # o_ref:      (TM, C)
    j = pl.program_id(1)
    tm = o_ref.shape[0]

    if full_window:
        win = kv_ref[...]                                    # (W, C), W == S_kv_pad
    else:
        w0 = pl.multiple_of(wstart_ref[j], 8)                # 8-aligned by construction
        win = kv_ref[pl.ds(w0, win_rows), :]                 # (W, C)

    cols = lax.broadcasted_iota(jnp.int32, (tm, win_rows), 1)

    if project_first:
        # Upsampling: project W << TM window rows, then expand (exact one-hot
        # row selection on the MXU; 0/1 weights copy rows bit-faithfully).
        proj = jnp.dot(win, w_ref[...], preferred_element_type=jnp.float32,
                       precision=_HIGHEST)                   # (W, C) f32
        proj = (proj + b_ref[...]).astype(o_ref.dtype)
        sel = (cols == idx_ref[...]).astype(o_ref.dtype)     # (TM, W)
        out = jnp.dot(sel, proj, preferred_element_type=jnp.float32,
                      precision=_HIGHEST)
        o_ref[...] = out.astype(o_ref.dtype)
    else:
        # Downsampling: gather the TM source rows, then project TM rows.
        sel = (cols == idx_ref[...]).astype(kv_ref.dtype)    # (TM, W)
        rows = jnp.dot(sel, win, preferred_element_type=jnp.float32,
                       precision=_HIGHEST).astype(kv_ref.dtype)
        y = jnp.dot(rows, w_ref[...], preferred_element_type=jnp.float32,
                    precision=_HIGHEST)
        o_ref[...] = (y + b_ref[...]).astype(o_ref.dtype)


# ---------------------------------------------------------------------------
# Plain tiled row projection (used by the long-kv fallback).
# ---------------------------------------------------------------------------
def _proj_kernel(x_ref, w_ref, b_ref, o_ref):
    y = jnp.dot(x_ref[...], w_ref[...], preferred_element_type=jnp.float32,
                precision=_HIGHEST)
    o_ref[...] = (y + b_ref[...]).astype(o_ref.dtype)


def _tiled_project(x2d, w2d, b2d, tm):
    m, c = x2d.shape
    tm_rows = _round_up(min(tm, _round_up(m, 8)), 8)
    n_tiles = (m + tm_rows - 1) // tm_rows
    itemsize = jnp.dtype(x2d.dtype).itemsize
    return pl.pallas_call(
        _proj_kernel,
        out_shape=jax.ShapeDtypeStruct((m, c), x2d.dtype),
        grid=(n_tiles,),
        in_specs=[
            pl.BlockSpec((tm_rows, c), lambda i: (i, 0)),
            pl.BlockSpec((c, c), lambda i: (0, 0)),     # resident weight
            pl.BlockSpec((1, c), lambda i: (0, 0)),     # resident bias
        ],
        out_specs=pl.BlockSpec((tm_rows, c), lambda i: (i, 0)),
        compiler_params=pltpu.CompilerParams(dimension_semantics=("parallel",)),
        cost_estimate=pl.CostEstimate(
            flops=int(2 * m * c * c), transcendentals=0,
            bytes_accessed=int((2 * m * c + c * c) * itemsize + 4 * c)),
    )(x2d, w2d, b2d)


def additor_forward(q, kv, weight=None, bias=None, *, identity=False,
                    tm=512, fused_vmem_budget=20 << 20):
    """Pallas implementation of Additor.forward.

    q:      (B, S_q, C)   only S_q (interpolation target length) is used
    kv:     (B, S_kv, C)
    weight: (C, C)  nn.Linear weight (out_features, in_features)
    bias:   (C,)    nn.Linear bias
    returns (B, S_q, C)
    """
    B, S_q, Cq = q.shape
    Bk, S_kv, C = kv.shape
    assert B == Bk and Cq == C

    idx = _nearest_indices(S_q, S_kv)            # static (trace-time) gather map

    if identity:
        # identity=True: proj is nn.Identity -> pure data movement.
        return jnp.take(kv, jnp.asarray(idx), axis=1)

    assert weight.shape == (C, C) and bias.shape == (C,)
    w2d = jnp.asarray(weight).T.astype(kv.dtype)          # y = x @ w2d
    b2d = jnp.asarray(bias).reshape(1, C).astype(jnp.float32)
    itemsize = jnp.dtype(kv.dtype).itemsize

    # ---- output row tiling ---------------------------------------------------
    tm_eff = _round_up(min(tm, _round_up(S_q, 8)), 8)
    n_tiles = (S_q + tm_eff - 1) // tm_eff
    project_first = S_q >= S_kv        # gather commutes with Linear: cheap order

    # ---- per-tile contiguous kv window (all static, host side) ----------------
    s_kv_pad = _round_up(S_kv, 8)
    lo = np.empty((n_tiles,), np.int64)
    hi = np.empty((n_tiles,), np.int64)
    for j in range(n_tiles):
        r0, r1 = j * tm_eff, min(S_q, (j + 1) * tm_eff)
        lo[j], hi[j] = idx[r0], idx[r1 - 1]
    span_max = int((hi - lo).max()) + 1
    win_rows = _round_up(span_max + 7, 8)        # +7 so the start can be 8-aligned
    if win_rows >= s_kv_pad:
        win_rows, full_window = s_kv_pad, True
        wstart = np.zeros((n_tiles,), np.int32)
    else:
        full_window = False
        wstart = np.minimum((lo // 8) * 8, s_kv_pad - win_rows).astype(np.int32)

    idx_local = np.zeros((n_tiles * tm_eff, 1), np.int32)   # padded rows select row 0
    for j in range(n_tiles):
        r0, r1 = j * tm_eff, min(S_q, (j + 1) * tm_eff)
        idx_local[r0:r1, 0] = idx[r0:r1] - wstart[j]

    # ---- VMEM footprint (double-buffered blocks + in-kernel f32 temporaries) --
    vmem_est = (2 * s_kv_pad * C * itemsize                 # kv slab
                + 2 * tm_eff * C * itemsize                 # output tile
                + 2 * tm_eff * 128 * 4                      # idx tile (lane-padded)
                + 2 * C * C * itemsize + 2 * 8 * C * 4      # weight + bias
                + (2 * win_rows * C + tm_eff * C) * 4       # window / proj / out f32
                + 2 * tm_eff * win_rows * 4)                # iota + one-hot

    if vmem_est <= fused_vmem_budget:
        kv_in = kv if s_kv_pad == S_kv else jnp.pad(
            kv, ((0, 0), (0, s_kv_pad - S_kv), (0, 0)))
        flops_tile = (2 * win_rows * C * C + 2 * tm_eff * win_rows * C
                      if project_first
                      else 2 * tm_eff * win_rows * C + 2 * tm_eff * C * C)
        kernel = functools.partial(
            _fused_additor_kernel, win_rows=win_rows,
            full_window=full_window, project_first=project_first)
        vmem_limit = int(min(48 << 20, max(2 * vmem_est + (2 << 20), 32 << 20)))

        return pl.pallas_call(
            kernel,
            out_shape=jax.ShapeDtypeStruct((B, S_q, C), kv.dtype),
            grid_spec=pltpu.PrefetchScalarGridSpec(
                num_scalar_prefetch=1,                       # window starts -> SMEM
                grid=(B, n_tiles),
                in_specs=[
                    pl.BlockSpec((tm_eff, 1), lambda b, j, ws: (j, 0)),       # idx
                    pl.BlockSpec((None, s_kv_pad, C), lambda b, j, ws: (b, 0, 0)),
                    pl.BlockSpec((C, C), lambda b, j, ws: (0, 0)),            # weight
                    pl.BlockSpec((1, C), lambda b, j, ws: (0, 0)),            # bias
                ],
                out_specs=pl.BlockSpec((None, tm_eff, C),
                                       lambda b, j, ws: (b, j, 0)),
            ),
            compiler_params=pltpu.CompilerParams(
                dimension_semantics=("parallel", "parallel"),   # shard tiles too (v7x)
                vmem_limit_bytes=vmem_limit),
            cost_estimate=pl.CostEstimate(
                flops=int(B * n_tiles * flops_tile),
                transcendentals=0,
                bytes_accessed=int((B * s_kv_pad * C + B * S_q * C
                                    + C * C + C) * itemsize
                                   + n_tiles * (tm_eff + 1) * 4)),
        )(jnp.asarray(wstart), jnp.asarray(idx_local), kv_in, w2d, b2d)

    # ---- long-kv fallback: cheapest-order two-pass ------------------------------
    # TODO(synk): stream per-tile kv windows from HBM with manual make_async_copy
    # to keep arbitrarily long kv on the fused path with no HBM intermediate.
    if project_first:
        proj = _tiled_project(kv.reshape(B * S_kv, C), w2d, b2d, tm)
        return jnp.take(proj.reshape(B, S_kv, C), jnp.asarray(idx), axis=1)
    gathered = jnp.take(kv, jnp.asarray(idx), axis=1)          # (B, S_q, C)
    out2d = _tiled_project(gathered.reshape(B * S_q, C), w2d, b2d, tm)
    return out2d.reshape(B, S_q, C)


def _reference(q, kv, weight, bias):
    """Pure-JAX re-implementation of Additor.forward (identity=False)."""
    B, S_kv, C = kv.shape
    S_q = q.shape[1]
    src = np.minimum((np.arange(S_q) * S_kv) // S_q, S_kv - 1)   # nearest interp
    kv_i = kv[:, src, :]                                         # (B, S_q, C)
    y = jnp.einsum("bsc,dc->bsd", kv_i, weight,
                   precision=jax.lax.Precision.HIGHEST)
    return y + bias[None, None, :]


if __name__ == "__main__":
    key = jax.random.PRNGKey(0)
    ks = jax.random.split(key, 8)

    C = 128
    weight = jax.random.normal(ks[0], (C, C), dtype=jnp.float32) * 0.02
    bias = jax.random.normal(ks[1], (C,), dtype=jnp.float32) * 0.02

    def check(q, kv, **kw):
        ref = _reference(q, kv, weight, bias)
        out = jax.block_until_ready(additor_forward(q, kv, weight, bias, **kw))
        assert out.shape == ref.shape, (out.shape, ref.shape)
        err = float(jnp.max(jnp.abs(out - ref)))
        assert err < 2e-3, err

    # 1) Upsampling, single fused tile (project-first branch, full kv window).
    B, S_q, S_kv = 2, 64, 24
    q = jax.random.normal(ks[2], (B, S_q, C), dtype=jnp.float32)
    kv = jax.random.normal(ks[3], (B, S_kv, C), dtype=jnp.float32)
    check(q, kv)

    # 2) Upsampling, multi-tile grid exercising the windowed kv slice per tile.
    B2, S_q2, S_kv2 = 2, 256, 96
    q2 = jax.random.normal(ks[4], (B2, S_q2, C), dtype=jnp.float32)
    kv2 = jax.random.normal(ks[5], (B2, S_kv2, C), dtype=jnp.float32)
    check(q2, kv2, tm=64)

    # 3) Downsampling with non-multiple-of-8 lengths (gather-first branch,
    #    padded kv slab, ragged last output tile).
    B3, S_q3, S_kv3 = 2, 18, 50
    q3 = jax.random.normal(ks[6], (B3, S_q3, C), dtype=jnp.float32)
    kv3 = jax.random.normal(ks[7], (B3, S_kv3, C), dtype=jnp.float32)
    check(q3, kv3)

    # 4) Long-kv fallback path (project-then-gather two-pass).
    check(q2, kv2, tm=64, fused_vmem_budget=0)

    print("KERNEL_OK")
</pallas_src>

<mosaic_0001>
module attributes {stable_mosaic.version = 11 : i64} {
  func.func @_fused_additor_kernel(%arg0: i32, %arg1: i32, %arg2: memref<1xi32, #tpu.memory_space<smem>>, %arg3: memref<64x1xi32, #tpu.memory_space<vmem>>, %arg4: memref<1x24x128xf32, #tpu.memory_space<vmem>>, %arg5: memref<128x128xf32, #tpu.memory_space<vmem>>, %arg6: memref<1x128xf32, #tpu.memory_space<vmem>>, %arg7: memref<1x64x128xf32, #tpu.memory_space<vmem>>) attributes {dimension_semantics = [#tpu.dimension_semantics<parallel>, #tpu.dimension_semantics<parallel>], iteration_bounds = array<i64: 2, 1>, scalar_prefetch = 1 : i64, scratch_operands = 0 : i64, tpu.core_type = #tpu.core_type<tc>, window_params = [{transform_indices = @transform_0, window_bounds = array<i64: 64, 1>}, {transform_indices = @transform_1, window_bounds = array<i64: 1, 24, 128>}, {pipeline_mode = #tpu.pipeline_mode<synchronous>, transform_indices = @transform_2, window_bounds = array<i64: 128, 128>}, {pipeline_mode = #tpu.pipeline_mode<synchronous>, transform_indices = @transform_3, window_bounds = array<i64: 1, 128>}, {transform_indices = @transform_4, window_bounds = array<i64: 1, 64, 128>}]} {
    %c0 = arith.constant 0 : index
    %c0_0 = arith.constant 0 : index
    %c0_1 = arith.constant 0 : index
    %0 = vector.load %arg4[%c0, %c0_0, %c0_1] : memref<1x24x128xf32, #tpu.memory_space<vmem>>, vector<1x24x128xf32>
    %1 = vector.shape_cast %0 : vector<1x24x128xf32> to vector<24x128xf32>
    %2 = tpu.iota {dimensions = array<i32: 1>} : vector<64x24xi32>
    %c0_2 = arith.constant 0 : index
    %c0_3 = arith.constant 0 : index
    %3 = vector.load %arg5[%c0_2, %c0_3] : memref<128x128xf32, #tpu.memory_space<vmem>>, vector<128x128xf32>
    %cst = arith.constant dense<0.000000e+00> : vector<24x128xf32>
    %4 = tpu.matmul %1, %3, %cst {dimension_numbers = #tpu.dot_dimension_numbers<[1], [0], [0], [1], [0, 0, 1, 1], [], []>, precision = #tpu.contract_precision<fp32>} : vector<24x128xf32>, vector<128x128xf32>, vector<24x128xf32> -> vector<24x128xf32>
    %c0_4 = arith.constant 0 : index
    %c0_5 = arith.constant 0 : index
    %5 = vector.load %arg6[%c0_4, %c0_5] : memref<1x128xf32, #tpu.memory_space<vmem>>, vector<1x128xf32>
    %6 = vector.broadcast %5 : vector<1x128xf32> to vector<24x128xf32>
    %7 = arith.addf %4, %6 : vector<24x128xf32>
    %c0_6 = arith.constant 0 : index
    %c0_7 = arith.constant 0 : index
    %8 = vector.load %arg3[%c0_6, %c0_7] : memref<64x1xi32, #tpu.memory_space<vmem>>, vector<64x1xi32>
    %9 = vector.broadcast %8 : vector<64x1xi32> to vector<64x24xi32>
    %10 = arith.cmpi eq, %2, %9 : vector<64x24xi32>
    %11 = arith.extui %10 : vector<64x24xi1> to vector<64x24xi32>
    %12 = arith.sitofp %11 : vector<64x24xi32> to vector<64x24xf32>
    %cst_8 = arith.constant dense<0.000000e+00> : vector<64x128xf32>
    %13 = tpu.matmul %12, %7, %cst_8 {dimension_numbers = #tpu.dot_dimension_numbers<[1], [0], [0], [1], [0, 0, 1, 1], [], []>, precision = #tpu.contract_precision<fp32>} : vector<64x24xf32>, vector<24x128xf32>, vector<64x128xf32> -> vector<64x128xf32>
    %c0_9 = arith.constant 0 : index
    %c0_10 = arith.constant 0 : index
    %c0_11 = arith.constant 0 : index
    %14 = vector.load %arg7[%c0_9, %c0_10, %c0_11] : memref<1x64x128xf32, #tpu.memory_space<vmem>>, vector<1x64x128xf32>
    %15 = vector.shape_cast %14 : vector<1x64x128xf32> to vector<64x128xf32>
    %16 = vector.shape_cast %13 : vector<64x128xf32> to vector<1x64x128xf32>
    tpu.vector_store %arg7[%c0_9, %c0_10, %c0_11], %16 {strides = array<i32>} : memref<1x64x128xf32, #tpu.memory_space<vmem>>, vector<1x64x128xf32>,
    return
  }
  func.func @transform_0(%arg0: i32, %arg1: i32, %arg2: memref<1xi32, #tpu.memory_space<smem>>) -> (i32, i32) {
    %c0_i32 = arith.constant 0 : i32
    %c0_i32_0 = arith.constant 0 : i32
    return %arg1, %c0_i32 : i32, i32
  }
  func.func @transform_1(%arg0: i32, %arg1: i32, %arg2: memref<1xi32, #tpu.memory_space<smem>>) -> (i32, i32, i32) {
    %c0_i32 = arith.constant 0 : i32
    %c0_i32_0 = arith.constant 0 : i32
    %c0_i32_1 = arith.constant 0 : i32
    return %arg0, %c0_i32, %c0_i32_0 : i32, i32, i32
  }
  func.func @transform_2(%arg0: i32, %arg1: i32, %arg2: memref<1xi32, #tpu.memory_space<smem>>) -> (i32, i32) {
    %c0_i32 = arith.constant 0 : i32
    %c0_i32_0 = arith.constant 0 : i32
    %c0_i32_1 = arith.constant 0 : i32
    return %c0_i32, %c0_i32_0 : i32, i32
  }
  func.func @transform_3(%arg0: i32, %arg1: i32, %arg2: memref<1xi32, #tpu.memory_space<smem>>) -> (i32, i32) {
    %c0_i32 = arith.constant 0 : i32
    %c0_i32_0 = arith.constant 0 : i32
    %c0_i32_1 = arith.constant 0 : i32
    return %c0_i32, %c0_i32_0 : i32, i32
  }
  func.func @transform_4(%arg0: i32, %arg1: i32, %arg2: memref<1xi32, #tpu.memory_space<smem>>) -> (i32, i32, i32) {
    %c0_i32 = arith.constant 0 : i32
    %c0_i32_0 = arith.constant 0 : i32
    return %arg0, %arg1, %c0_i32 : i32, i32, i32
  }
}

</mosaic_0001>

<bundles_post_ra>
// kernel: tpu_custom_call.1
= control target key start
LH: loop header
LB: loop body
LE: loop exit
PB: predicated region body
PF: predicated region fallthrough
CT: control target
= control target key end

     0   :  { %11 = vsyncpa [#allocation5], 0  ;;  %s3598_s0 = inlined_call_operand.<no memory space> [shape: s32[1], index: 0, kind: input, shape index: {}]   ;;  %s3599_s1 = inlined_call_operand.vmem [shape: s32[64,1], index: 1, kind: input, shape index: {}]   ;;  %s3600_s2 = inlined_call_operand.vmem [shape: f32[2,24,128], index: 2, kind: input, shape index: {}]   ;;  %s3601_s3 = inlined_call_operand.hbm [shape: f32[128,128], index: 3, kind: input, shape index: {}]   ;;  %s3602_s4 = inlined_call_operand.vmem [shape: f32[1,128], index: 4, kind: input, shape index: {}]   ;;  %s3603_s5 = inlined_call_operand.hbm [shape: f32[2,64,128], index: 5, kind: output, shape index: {}]  }
   0x1   :  { %12 = vsyncpa [#allocation6], 0 }
   0x2   :  { %14 = vsyncpa [#allocation6 + $0x1], 0  ;;  %s2789_s18 = smov 0   ;;  %s2791_s0 = smov 0  }
   0x3   :  { %s2793_s19 = smov 0   ;;  %s2795_s20 = smov 0  }
   0x4   :  { %s2797_s21 = smov 0   ;;  %s2799_s22 = smov 0  }
   0x5 LB: > { %s1983_s23 = sadd.s32 4294967295, %s2748_s22   ;;  %s1984_s24 = sadd.s32 4294967294, %s2748_s22   ;;  %s2748_s22 = sphi %s2799_s22, %s20_s22   ;;  %s2744_s21 = sphi %s2797_s21, %s3612_s21   ;;  %s2740_s20 = sphi %s2795_s20, %s3611_s20   ;;  %s2736_s19 = sphi %s2793_s19, %s3610_s19   ;;  %s2732_s0 = sphi %s2791_s0, %s3609_s0   ;;  %s2728_s18 = sphi %s2789_s18, %s3608_s18  }
   0x6   : > { %s32_s25 = sadd.s32 1, %s2744_s21  ;;  %s135_s26 = sadd.s32 1, %s2736_s19 }
   0x7   : > { %p34_p0 = scmp.ge.s32.totalorder %s32_s25, 2  ;;  %p145_p1 = scmp.ne.s32.totalorder %s2736_s19, %s2732_s0 }
   0x8   : > { %p146_p2 = scmp.eq.s32.totalorder %s1983_s23, 1  ;;  %p151_p3 = scmp.ne.s32.totalorder %s2732_s0, %s2728_s18 }
   0x9   : > { %s3614_s25 = smov (%p34_p0, %s32_s25), 0  ;;  %p152_p5 = scmp.eq.s32.totalorder %s1984_s24, 1 }
   0xa   : > { %p2829_p4 = por %p146_p2, %p145_p1  ;;  %s130_s28 = ssub.s32 %s2744_s21, %s3614_s25 }
   0xb   : > { %p1985_p6 = scmp.ge.s32.totalorder %s2748_s22, 1  ;;  %p133_p7 = scmp.eq.s32.totalorder %s130_s28, 0 }
   0xc   : > { %p2836_p8 = por %p152_p5, %p151_p3  ;;  %p159_p9 = scmp.lt.s32.totalorder %s2748_s22, 3 }
   0xd   : > { %s2842_s30 = scalar_select %p133_p7, %s2736_s19, %s135_s26  }
   0xe   : > { %p2844_p10 = pnand %p1985_p6, %p159_p9  ;;  %p2848_p11 = scmp.eq.s32.totalorder %s1983_s23, 0 }
   0xf   : > { %s2750_s8 = smov [#allocation4]  }
  0x10   : > { %p2573_p12 = pneg %p2844_p10  ;;  %s180_s9 = sshll.u32 %s2750_s8, 4  ;;  %s181_s9 = int_to_ptr.vmem [resolvable:$true] %s180_s9 }
  0x11   : > { %s2653_s10 = scalar_lea.vmem %s181_s9, 2048  ;;  %p2661_p5 = scmp.lt.s32.totalorder %s181_s9, %s181_s9 }
  0x12   : > { %p2574_p13 = pnand %p2848_p11, %p2573_p12  ;;  %p2654_p1 = scmp.ne.s32.totalorder %s181_s9, %s2653_s10 }
  0x13   : > { %p2662_p6 = scmp.lt.s32.totalorder %s2653_s10, %s2653_s10 }
  0x14   : > { %p2644_p0 = pneg %p2574_p13 }
  0x15   : > { %p2663_p7 = por %p2662_p6, %p2661_p5 }
  0x16   : > { %p2656_p2 = pnand %p2654_p1, %p2644_p0 }
  0x18   : > { %p2657_p3 = pneg %p2656_p2 }
  0x1a   : > { %p2664_p9 = pnand %p2663_p7, %p2657_p3 }
  0x1c   : > { %2667 = shalt.err (!%p2664_p9)
}
  0x1d   : > { %s2751_s11 = smov 128   ;;  %s2752_s12 = smov 8  }
  0x1e   : > { %2576 = dma.hbm_to_vmem [thread:$0]  (!%p2574_p13), %s3601_s3, 2048, %s181_s9, [#allocation5], %s2751_s11, %s2751_s11, %s2752_s12  }
  0x1f   : > { %207 = sbr.rel (%p2844_p10) target bundleno = 632 (0x278), region = 36 }
  0x24   : > { %2719 = dma.done.wait (%p2848_p11), [#allocation5], 2048  }
  0x25   : > { %2721 = vsyncadd (%p2848_p11), [#allocation5], 4294965248  ;;  %v2753_v0 = vmov 0.0   ;;  %vm2754_vm0 = vmmov 0   ;;  %p244_p10 = scmp.lt.s32.totalorder %s2740_s20, 1  ;;  %v2755_v1 = vmov 0  }
  0x26   : > { %2212 = vmatprep.subr.mxu0 %v2753_v0  ;;  %2253 = vmatprep.subr.mxu1 %v2753_v0  ;;  %v270_v2 = vld [vmem:[#allocation4 + $0x78] sm:$0xff]  ;;  %v269_v3 = vld [vmem:[#allocation4 + $0x70] sm:$0xff]  ;;  %v268_v4 = vld [vmem:[#allocation4 + $0x68] sm:$0xff]  ;;  %vm1061_vm1 = vcmask 195584   ;;  %s235_s6 = sand.u32 1, %s2732_s0   ;;  %s2031_s10 = sshll.u32 %s2740_s20, 10 }
  0x27   : > { %2244 = vmatprep.mubr.msk.f32.mxu0 %vm2754_vm0, %v2753_v0  ;;  %2285 = vmatprep.mubr.msk.f32.mxu1 %vm2754_vm0, %v2753_v0  ;;  %s2873_s15 = scalar_select %p244_p10, %s2740_s20, 1  ;;  %v2875_v5 = vand.u32 4294901760, %v270_v2  ;;  %v2877_v6 = vand.u32 4294901760, %v269_v3  ;;  %v2879_v7 = vand.u32 4294901760, %v268_v4  ;;  %v267_v8 = vld [vmem:[#allocation4 + $0x60] sm:$0xff]  ;;  %v266_v9 = vld [vmem:[#allocation4 + $0x58] sm:$0xff] }
  0x28   : > { %2640 = vset.pattern.permute.xlu0 %v2755_v1  ;;  %2641 = vset.pattern.permute.xlu1 %v2755_v1  ;;  %v265_v10 = vld [vmem:[#allocation4 + $0x50] sm:$0xff]  ;;  %v2881_v11 = vand.u32 4294901760, %v267_v8  ;;  %v2883_v12 = vand.u32 4294901760, %v266_v9  ;;  %v264_v14 = vld [vmem:[#allocation4 + $0x48] sm:$0xff]  ;;  %v263_v15 = vld [vmem:[#allocation4 + $0x40] sm:$0xff]  ;;  %s3548_s13 = scalar_lea.hbm %s3603_s5, %s2031_s10  ;;  %s3553_s14 = scalar_lea.sflag [#allocation6], %s235_s6 }
  0x29   : > { %v2885_v13 = vand.u32 4294901760, %v265_v10  ;;  %2213 = vmatpush3.msra.mxu0 %v2875_v5  ;;  %v2889_v16 = vsub.f32 %v270_v2, %v2875_v5  ;;  %v2892_v17 = vsub.f32 %v269_v3, %v2877_v6  ;;  %v2894_v18 = vand.u32 4294901760, %v264_v14  ;;  %v262_v20 = vld [vmem:[#allocation4 + $0x38] sm:$0xff]  ;;  %v261_v27 = vld [vmem:[#allocation4 + $0x30] sm:$0xff]  ;;  %s2566_s16 = smul.u32 24, %s2873_s15  ;;  %v1005_v32 = vld [vmem:[%s3599_s1] sm:$0xff] }
  0x2a   : > { %v2897_v19 = vsub.f32 %v268_v4, %v2879_v7  ;;  %2214 = vmatprep.subr.mxu0 %v2753_v0  ;;  %v2901_v21 = vsub.f32 %v267_v8, %v2881_v11  ;;  %v2904_v22 = vsub.f32 %v266_v9, %v2883_v12  ;;  %v2910_v26 = vand.u32 4294901760, %v263_v15  ;;  %v1007_v37 = vld [vmem:[%s3599_s1 + $0x10] sm:$0xff]  ;;  %v260_v39 = vld [vmem:[#allocation4 + $0x28] sm:$0xff]  ;;  %1014 = vperm.xlu0 %2640, %v1005_v32   ;;  %v259_v44 = vld [vmem:[#allocation4 + $0x20] sm:$0xff]  ;;  %s2756_s15 = smov [#allocation7]  }
  0x2b   : > { %2215 = vmatpush3.msra.mxu0 %v2877_v6  ;;  %v392_v23 = vand.u32 4294901760, %v2889_v16  ;;  %v399_v24 = vand.u32 4294901760, %v2892_v17  ;;  %v2915_v29 = vand.u32 4294901760, %v262_v20  ;;  %v2919_v31 = vsub.f32 %v265_v10, %v2885_v13  ;;  %s2951_s7 = scalar_lea.vmem %s3600_s2, %s2566_s16  ;;  %1020 = vperm.xlu1 %2641, %v1007_v37   ;;  %v258_v52 = vld [vmem:[#allocation4 + $0x18] sm:$0xff]  ;;  %v257_v57 = vld [vmem:[#allocation4 + $0x10] sm:$0xff]  ;;  %v256_v63 = vld [vmem:[#allocation4 + $0x8] sm:$0xff] }
  0x2c   : > { %v406_v25 = vand.u32 4294901760, %v2897_v19  ;;  %2216 = vmatprep.subr.mxu0 %v2753_v0  ;;  %v413_v28 = vand.u32 4294901760, %v2901_v21  ;;  %v420_v30 = vand.u32 4294901760, %v2904_v22  ;;  %v2935_v36 = vsub.f32 %v264_v14, %v2894_v18  ;;  %v250_v53 = vld [vmem:[%s2951_s7] sm:$0xff]  ;;  %s2672_s16 = sshll.u32 %s2756_s15, 4  ;;  %s2673_s16 = int_to_ptr.vmem [resolvable:$false] %s2672_s16 }
  0x2d   : > { %2217 = vmatpush3.msra.mxu0 %v2879_v7  ;;  %v393_v33 = vsub.f32 %v2889_v16, %v392_v23  ;;  %v400_v34 = vsub.f32 %v2892_v17, %v399_v24  ;;  %v2941_v38 = vand.u32 4294901760, %v261_v27  ;;  %v427_v43 = vand.u32 4294901760, %v2919_v31  ;;  %v255_v10 = vld [vmem:[#allocation4] sm:$0xff]  ;;  %s2674_s17 = scalar_lea.vmem %s2673_s16, 2048 }
  0x2e   : > { %v407_v35 = vsub.f32 %v2897_v19, %v406_v25  ;;  %2218 = vmatprep.subr.mxu0 %v2753_v0  ;;  %v414_v42 = vsub.f32 %v2901_v21, %v413_v28  ;;  %v421_v45 = vsub.f32 %v2904_v22, %v420_v30  ;;  %v2958_v46 = vsub.f32 %v263_v15, %v2910_v26 }
  0x2f   : > { %2219 = vmatpush3.msra.mxu0 %v2881_v11  ;;  %v394_v40 = vand.u32 4294901760, %v393_v33  ;;  %v401_v41 = vand.u32 4294901760, %v400_v34  ;;  %v2961_v48 = vand.u32 4294901760, %v260_v39  ;;  %v434_v49 = vand.u32 4294901760, %v2935_v36 }
  0x30   : > { %2220 = vmatprep.subr.mxu0 %v2753_v0  ;;  %v408_v47 = vand.u32 4294901760, %v407_v35  ;;  %v2965_v50 = vsub.f32 %v262_v20, %v2915_v29  ;;  %v2969_v51 = vand.u32 4294901760, %v259_v44  ;;  %v415_v54 = vand.u32 4294901760, %v414_v42 }
  0x31   : > { %2221 = vmatpush3.msra.mxu0 %v2883_v12  ;;  %2254 = vmatpush3.msra.mxu1 %v394_v40  ;;  %v428_v55 = vsub.f32 %v2919_v31, %v427_v43  ;;  %v441_v56 = vand.u32 4294901760, %v2958_v46  ;;  %v2978_v58 = vsub.f32 %v261_v27, %v2941_v38  ;;  %v422_v59 = vand.u32 4294901760, %v421_v45 }
  0x32   : > { %2222 = vmatprep.subr.mxu0 %v2753_v0  ;;  %2255 = vmatprep.subr.mxu1 %v2753_v0  ;;  %v448_v60 = vand.u32 4294901760, %v2965_v50  ;;  %v435_v61 = vsub.f32 %v2935_v36, %v434_v49  ;;  %v2987_v62 = vand.u32 4294901760, %v258_v52  ;;  %v2990_v1 = vsub.f32 %v260_v39, %v2961_v48 }
  0x33   : > { %2223 = vmatpush3.msra.mxu0 %v2885_v13  ;;  %2256 = vmatpush3.msra.mxu1 %v401_v41  ;;  %v2992_v2 = vand.u32 4294901760, %v250_v53  ;;  %v2996_v3 = vand.u32 4294901760, %v257_v57  ;;  %v429_v4 = vand.u32 4294901760, %v428_v55  ;;  %v442_v8 = vsub.f32 %v2958_v46, %v441_v56 }
  0x34   : > { %2224 = vmatprep.subr.mxu0 %v2753_v0  ;;  %2257 = vmatprep.subr.mxu1 %v2753_v0  ;;  %v455_v9 = vand.u32 4294901760, %v2978_v58  ;;  %v3004_v14 = vsub.f32 %v259_v44, %v2969_v51  ;;  %v449_v15 = vsub.f32 %v2965_v50, %v448_v60  ;;  %v3011_v20 = vand.u32 4294901760, %v256_v63 }
  0x35   : > { %2225 = vmatpush3.msra.mxu0 %v2894_v18  ;;  %2258 = vmatpush3.msra.mxu1 %v408_v47  ;;  %v436_v27 = vand.u32 4294901760, %v435_v61  ;;  %v462_v32 = vand.u32 4294901760, %v2990_v1  ;;  %v3016_v33 = vsub.f32 %v250_v53, %v2992_v2  ;;  %v3019_v34 = vsub.f32 %v258_v52, %v2987_v62 }
  0x36   : > { %2226 = vmatprep.subr.mxu0 %v2753_v0  ;;  %2259 = vmatprep.subr.mxu1 %v2753_v0  ;;  %v3023_v35 = vand.u32 4294901760, %v255_v10  ;;  %v443_v37 = vand.u32 4294901760, %v442_v8  ;;  %v456_v39 = vsub.f32 %v2978_v58, %v455_v9  ;;  %v469_v40 = vand.u32 4294901760, %v3004_v14 }
  0x37   : > { %2227 = vmatpush3.msra.mxu0 %v2910_v26  ;;  %2260 = vmatpush3.msra.mxu1 %v415_v54  ;;  %v3031_v41 = vsub.f32 %v257_v57, %v2996_v3  ;;  %v450_v42 = vand.u32 4294901760, %v449_v15  ;;  %v463_v44 = vsub.f32 %v2990_v1, %v462_v32  ;;  %v361_v45 = vand.u32 4294901760, %v3016_v33 }
  0x38   : > { %2228 = vmatprep.subr.mxu0 %v2753_v0  ;;  %2261 = vmatprep.subr.mxu1 %v2753_v0  ;;  %v476_v47 = vand.u32 4294901760, %v3019_v34  ;;  %v3042_v52 = vsub.f32 %v256_v63, %v3011_v20  ;;  %v457_v53 = vand.u32 4294901760, %v456_v39  ;;  %v470_v54 = vsub.f32 %v3004_v14, %v469_v40 }
  0x39   : > { %2229 = vmatpush3.msra.mxu0 %v2915_v29  ;;  %2262 = vmatpush3.msra.mxu1 %v422_v59  ;;  %v483_v55 = vand.u32 4294901760, %v3031_v41  ;;  %v3052_v57 = vsub.f32 %v255_v10, %v3023_v35  ;;  %v464_v59 = vand.u32 4294901760, %v463_v44  ;;  %v362_v61 = vsub.f32 %v3016_v33, %v361_v45 }
  0x3a   : > { %2230 = vmatprep.subr.mxu0 %v2753_v0  ;;  %2263 = vmatprep.subr.mxu1 %v2753_v0  ;;  %v477_v63 = vsub.f32 %v3019_v34, %v476_v47  ;;  %v471_v8 = vand.u32 4294901760, %v470_v54  ;;  %v251_v54 = vld [vmem:[%s2951_s7 + $0x8] sm:$0xff] }
  0x3b   : > { %2231 = vmatpush3.msra.mxu0 %v2941_v38  ;;  %2264 = vmatpush3.msra.mxu1 %v429_v4  ;;  %v490_v4 = vand.u32 4294901760, %v3042_v52  ;;  %v484_v10 = vsub.f32 %v3031_v41, %v483_v55  ;;  %v497_v15 = vand.u32 4294901760, %v3052_v57 }
  0x3c   : > { %2232 = vmatprep.subr.mxu0 %v2753_v0  ;;  %2265 = vmatprep.subr.mxu1 %v2753_v0 }
  0x3d   : > { %2233 = vmatpush3.msra.mxu0 %v2961_v48  ;;  %2266 = vmatpush3.msra.mxu1 %v436_v27  ;;  %v363_v27 = vand.u32 4294901760, %v362_v61  ;;  %v491_v39 = vsub.f32 %v3042_v52, %v490_v4  ;;  %v498_v44 = vsub.f32 %v3052_v57, %v497_v15  ;;  %v3092_v61 = vand.u32 4294901760, %v251_v54 }
  0x3e   : > { %2234 = vmatprep.subr.mxu0 %v2753_v0  ;;  %2267 = vmatprep.subr.mxu1 %v2753_v0 }
  0x3f   : > { %2235 = vmatpush3.msra.mxu0 %v2969_v51  ;;  %2268 = vmatpush3.msra.mxu1 %v443_v37  ;;  %v478_v37 = vand.u32 4294901760, %v477_v63  ;;  %v252_v63 = vld [vmem:[%s2951_s7 + $0x10] sm:$0xff]  ;;  %s1991_s7 = sshll.u32 %s235_s6, 6 }
  0x40   : > { %2236 = vmatprep.subr.mxu0 %v2753_v0  ;;  %2269 = vmatprep.subr.mxu1 %v2753_v0  ;;  %s3532_s8 = scalar_lea.vmem [#allocation7], %s1991_s7 }
  0x41   : > { %2237 = vmatpush3.msra.mxu0 %v2987_v62  ;;  %2270 = vmatpush3.msra.mxu1 %v450_v42  ;;  %v485_v42 = vand.u32 4294901760, %v484_v10  ;;  %v3107_v10 = vand.u32 4294901760, %v252_v63  ;;  %s1883_s9 = sshll.u32 %s3532_s8, 4  ;;  %s3542_s9 = int_to_ptr.vmem [resolvable:$true] %s1883_s9 }
  0x42   : > { %2238 = vmatprep.subr.mxu0 %v2753_v0  ;;  %2271 = vmatprep.subr.mxu1 %v2753_v0  ;;  %s2668_s20 = scalar_lea.vmem %s3542_s9, 1024  ;;  %p2675_p0 = scmp.lt.s32.totalorder %s3542_s9, %s2673_s16 }
  0x43   : > { %2239 = vmatpush3.msra.mxu0 %v2996_v3  ;;  %2272 = vmatpush3.msra.mxu1 %v457_v53  ;;  %v492_v53 = vand.u32 4294901760, %v491_v39  ;;  %p2669_p11 = scmp.ne.s32.totalorder %s3542_s9, %s2668_s20  ;;  %p2676_p1 = scmp.lt.s32.totalorder %s2674_s17, %s2668_s20 }
  0x44   : > { %2240 = vmatprep.subr.mxu0 %v2753_v0  ;;  %2273 = vmatprep.subr.mxu1 %v2753_v0 }
  0x45   : > { %2241 = vmatpush3.msra.mxu0 %v3011_v20  ;;  %2274 = vmatpush3.msra.mxu1 %v464_v59  ;;  %v499_v59 = vand.u32 4294901760, %v498_v44  ;;  %p2670_p12 = pnand %p2669_p11, %p2829_p4  ;;  %p2677_p2 = por %p2676_p1, %p2675_p0 }
  0x46   : > { %2242 = vmatprep.subr.mxu0 %v2753_v0  ;;  %2275 = vmatprep.subr.mxu1 %v2753_v0 }
  0x47   : > { %2243 = vmatpush3.msra.mxu0 %v3023_v35  ;;  %2276 = vmatpush3.msra.mxu1 %v471_v8  ;;  %v3103_v8 = vsub.f32 %v251_v54, %v3092_v61  ;;  %p2671_p13 = pneg %p2670_p12 }
  0x48   : > { %2277 = vmatprep.subr.mxu1 %v2753_v0  ;;  %2294 = vmatprep.subr.mxu0 %v2753_v0 }
  0x49   : > { %2245 = vmatmul.mubr.f32.vlgmr.msra.gmra.mxu0 %v363_v27  ;;  %2278 = vmatpush3.msra.mxu1 %v478_v37  ;;  %v371_v27 = vand.u32 4294901760, %v3103_v8  ;;  %v3119_v37 = vsub.f32 %v252_v63, %v3107_v10  ;;  %p2678_p3 = pnand %p2677_p2, %p2671_p13 }
  0x4a   : > { %2295 = vmatpush3.msra.mxu0 %v2889_v16  ;;  %2279 = vmatprep.subr.mxu1 %v2753_v0  ;;  %v253_v16 = vlaneseq }
  0x4b   : > { %2296 = vmatprep.subr.mxu0 %v2753_v0  ;;  %2280 = vmatpush3.msra.mxu1 %v485_v42  ;;  %v372_v39 = vsub.f32 %v3103_v8, %v371_v27  ;;  %v381_v42 = vand.u32 4294901760, %v3119_v37 }
  0x4c   : > { %2297 = vmatpush3.msra.mxu0 %v2892_v17  ;;  %2281 = vmatprep.subr.mxu1 %v2753_v0  ;;  %v3319_v17 = vand.u32 127, %v253_v16 }
  0x4d   : > { %2298 = vmatprep.subr.mxu0 %v2753_v0  ;;  %2282 = vmatpush3.msra.mxu1 %v492_v53  ;;  %v373_v44 = vand.u32 4294901760, %v372_v39  ;;  %v382_v53 = vsub.f32 %v3119_v37, %v381_v42 }
  0x4e   : > { %2299 = vmatpush3.msra.mxu0 %v2897_v19  ;;  %2283 = vmatprep.subr.mxu1 %v2753_v0 }
  0x4f   : > { %2300 = vmatprep.subr.mxu0 %v2753_v0  ;;  %2284 = vmatpush3.msra.mxu1 %v499_v59  ;;  %v383_v54 = vand.u32 4294901760, %v382_v53 }
  0x50   : > { %2301 = vmatpush3.msra.mxu0 %v2901_v21  ;;  %2286 = vmatmul.mubr.f32.vlgmr.msra.gmra.mxu1 %v2992_v2 }
  0x51   : > { %2302 = vmatprep.subr.mxu0 %v2753_v0  ;;  %2335 = vmatprep.subr.mxu1 %v2753_v0 }
  0x52   : > { %2303 = vmatpush3.msra.mxu0 %v2904_v22  ;;  %2336 = vmatpush3.msra.mxu1 %v2875_v5 }
  0x53   : > { %2304 = vmatprep.subr.mxu0 %v2753_v0  ;;  %2337 = vmatprep.subr.mxu1 %v2753_v0 }
  0x54   : > { %2305 = vmatpush3.msra.mxu0 %v2919_v31  ;;  %2338 = vmatpush3.msra.mxu1 %v2877_v6 }
  0x55   : > { %2306 = vmatprep.subr.mxu0 %v2753_v0  ;;  %2339 = vmatprep.subr.mxu1 %v2753_v0 }
  0x56   : > { %2307 = vmatpush3.msra.mxu0 %v2935_v36  ;;  %2340 = vmatpush3.msra.mxu1 %v2879_v7 }
  0x57   : > { %2308 = vmatprep.subr.mxu0 %v2753_v0  ;;  %2341 = vmatprep.subr.mxu1 %v2753_v0 }
  0x58   : > { %2309 = vmatpush3.msra.mxu0 %v2958_v46  ;;  %2342 = vmatpush3.msra.mxu1 %v2881_v11 }
  0x59   : > { %2310 = vmatprep.subr.mxu0 %v2753_v0  ;;  %2343 = vmatprep.subr.mxu1 %v2753_v0 }
  0x5a   : > { %2311 = vmatpush3.msra.mxu0 %v2965_v50  ;;  %2344 = vmatpush3.msra.mxu1 %v2883_v12 }
  0x5b   : > { %2312 = vmatprep.subr.mxu0 %v2753_v0  ;;  %2345 = vmatprep.subr.mxu1 %v2753_v0 }
  0x5c   : > { %2313 = vmatpush3.msra.mxu0 %v2978_v58  ;;  %2346 = vmatpush3.msra.mxu1 %v2885_v13 }
  0x5d   : > { %2314 = vmatprep.subr.mxu0 %v2753_v0  ;;  %2347 = vmatprep.subr.mxu1 %v2753_v0 }
  0x5e   : > { %2315 = vmatpush3.msra.mxu0 %v2990_v1  ;;  %2348 = vmatpush3.msra.mxu1 %v2894_v18 }
  0x5f   : > { %2316 = vmatprep.subr.mxu0 %v2753_v0  ;;  %2349 = vmatprep.subr.mxu1 %v2753_v0 }
  0x60   : > { %2247 = vmatprep.mubr.msk.f32.mxu0 %vm2754_vm0, %v2753_v0  ;;  %2317 = vmatpush3.msra.mxu0 %v3004_v14 }
  0x61   : > { %2350 = vmatpush3.msra.mxu1 %v2910_v26  ;;  %2248 = vmatmul.mubr.f32.gmra.mxu0 %v373_v44 }
  0x62   : > { %2318 = vmatprep.subr.mxu0 %v2753_v0  ;;  %2351 = vmatprep.subr.mxu1 %v2753_v0 }
  0x63   : > { %2319 = vmatpush3.msra.mxu0 %v3019_v34  ;;  %2352 = vmatpush3.msra.mxu1 %v2915_v29 }
  0x64   : > { %2320 = vmatprep.subr.mxu0 %v2753_v0  ;;  %2353 = vmatprep.subr.mxu1 %v2753_v0 }
  0x65   : > { %2250 = vmatprep.mubr.msk.f32.mxu0 %vm2754_vm0, %v2753_v0  ;;  %2321 = vmatpush3.msra.mxu0 %v3031_v41 }
  0x66   : > { %2354 = vmatpush3.msra.mxu1 %v2941_v38  ;;  %2251 = vmatmul.mubr.f32.gmra.mxu0 %v383_v54 }
  0x67   : > { %2322 = vmatprep.subr.mxu0 %v2753_v0  ;;  %2355 = vmatprep.subr.mxu1 %v2753_v0 }
  0x68   : > { %2323 = vmatpush3.msra.mxu0 %v3042_v52  ;;  %2356 = vmatpush3.msra.mxu1 %v2961_v48 }
  0x69   : > { %2288 = vmatprep.mubr.msk.f32.mxu1 %vm2754_vm0, %v2753_v0  ;;  %2324 = vmatprep.subr.mxu0 %v2753_v0 }
  0x6a   : > { %2357 = vmatprep.subr.mxu1 %v2753_v0  ;;  %2289 = vmatmul.mubr.f32.gmra.mxu1 %v3092_v61 }
  0x6b   : > { %2325 = vmatpush3.msra.mxu0 %v3052_v57  ;;  %2326 = vmatprep.mubr.msk.f32.mxu0 %vm2754_vm0, %v2753_v0 }
  0x6c   : > { %2358 = vmatpush3.msra.mxu1 %v2969_v51  ;;  %2327 = vmatmul.mubr.f32.vlgmr.msra.gmra.mxu0 %v3016_v33 }
  0x6d   : > { %2359 = vmatprep.subr.mxu1 %v2753_v0  ;;  %2376 = vmatprep.subr.mxu0 %v2753_v0 }
  0x6e   : > { %2360 = vmatpush3.msra.mxu1 %v2987_v62  ;;  %2377 = vmatpush3.msra.mxu0 %v392_v23 }
  0x6f   : > { %2291 = vmatprep.mubr.msk.f32.mxu1 %vm2754_vm0, %v2753_v0  ;;  %2361 = vmatprep.subr.mxu1 %v2753_v0 }
  0x70   : > { %2378 = vmatprep.subr.mxu0 %v2753_v0  ;;  %2292 = vmatmul.mubr.f32.gmra.mxu1 %v3107_v10 }
  0x71   : > { %2329 = vmatprep.mubr.msk.f32.mxu0 %vm2754_vm0, %v2753_v0  ;;  %2362 = vmatpush3.msra.mxu1 %v2996_v3 }
  0x72   : > { %2379 = vmatpush3.msra.mxu0 %v399_v24  ;;  %2363 = vmatprep.subr.mxu1 %v2753_v0 }
  0x73   : > { %2330 = vmatmul.mubr.f32.gmra.mxu0 %v3103_v8  ;;  %2380 = vmatprep.subr.mxu0 %v2753_v0 }
  0x74   : > { %2364 = vmatpush3.msra.mxu1 %v3011_v20  ;;  %2381 = vmatpush3.msra.mxu0 %v406_v25 }
  0x75   : > { %2365 = vmatprep.subr.mxu1 %v2753_v0  ;;  %2382 = vmatprep.subr.mxu0 %v2753_v0 }
  0x76   : > { %2332 = vmatprep.mubr.msk.f32.mxu0 %vm2754_vm0, %v2753_v0  ;;  %2366 = vmatpush3.msra.mxu1 %v3023_v35 }
  0x77   : > { %2367 = vmatprep.mubr.msk.f32.mxu1 %vm2754_vm0, %v2753_v0  ;;  %2383 = vmatpush3.msra.mxu0 %v413_v28  ;;  %v1993_v28 = vld [vmem:[%s3602_s4] ss:$0 sm:$0xff] }
  0x78   : > { %2333 = vmatmul.mubr.f32.gmra.mxu0 %v3119_v37  ;;  %2368 = vmatmul.mubr.f32.vlgmr.msra.gmra.mxu1 %v361_v45 }
  0x79   : > { %2384 = vmatprep.subr.mxu0 %v2753_v0  ;;  %2417 = vmatprep.subr.mxu1 %v2753_v0 }
  0x7a   : > { %2385 = vmatpush3.msra.mxu0 %v420_v30  ;;  %2418 = vmatpush3.msra.mxu1 %v2875_v5  ;;  %v1006_v5 = vld [vmem:[%s3599_s1 + $0x8] sm:$0xff] }
  0x7b   : > { %2386 = vmatprep.subr.mxu0 %v2753_v0  ;;  %2419 = vmatprep.subr.mxu1 %v2753_v0 }
  0x7c   : > { %2370 = vmatprep.mubr.msk.f32.mxu1 %vm2754_vm0, %v2753_v0  ;;  %2387 = vmatpush3.msra.mxu0 %v427_v43 }
  0x7d   : > { %2420 = vmatpush3.msra.mxu1 %v2877_v6  ;;  %2388 = vmatprep.subr.mxu0 %v2753_v0  ;;  %v1008_v6 = vld [vmem:[%s3599_s1 + $0x18] sm:$0xff] }
  0x7e   : > { %2371 = vmatmul.mubr.f32.gmra.mxu1 %v371_v27  ;;  %2421 = vmatprep.subr.mxu1 %v2753_v0 }
  0x7f   : > { %2389 = vmatpush3.msra.mxu0 %v434_v49  ;;  %2422 = vmatpush3.msra.mxu1 %v2879_v7  ;;  %v1009_v7 = vld [vmem:[%s3599_s1 + $0x20] sm:$0xff] }
  0x80   : > { %2390 = vmatprep.subr.mxu0 %v2753_v0  ;;  %2423 = vmatprep.subr.mxu1 %v2753_v0 }
  0x81   : > { %2373 = vmatprep.mubr.msk.f32.mxu1 %vm2754_vm0, %v2753_v0  ;;  %2391 = vmatpush3.msra.mxu0 %v441_v56 }
  0x82   : > { %2424 = vmatpush3.msra.mxu1 %v2881_v11  ;;  %2392 = vmatprep.subr.mxu0 %v2753_v0  ;;  %v1010_v11 = vld [vmem:[%s3599_s1 + $0x28] sm:$0xff] }
  0x83   : > { %2374 = vmatmul.mubr.f32.gmra.mxu1 %v381_v42  ;;  %2425 = vmatprep.subr.mxu1 %v2753_v0 }
  0x84   : > { %2393 = vmatpush3.msra.mxu0 %v448_v60  ;;  %2426 = vmatpush3.msra.mxu1 %v2883_v12  ;;  %v1011_v12 = vld [vmem:[%s3599_s1 + $0x30] sm:$0xff] }
  0x85   : > { %2394 = vmatprep.subr.mxu0 %v2753_v0  ;;  %2427 = vmatprep.subr.mxu1 %v2753_v0 }
  0x86   : > { %2395 = vmatpush3.msra.mxu0 %v455_v9  ;;  %2428 = vmatpush3.msra.mxu1 %v2885_v13  ;;  %v1012_v13 = vld [vmem:[%s3599_s1 + $0x38] sm:$0xff] }
  0x87   : > { %2396 = vmatprep.subr.mxu0 %v2753_v0  ;;  %2429 = vmatprep.subr.mxu1 %v2753_v0 }
  0x88   : > { %2397 = vmatpush3.msra.mxu0 %v462_v32  ;;  %2430 = vmatpush3.msra.mxu1 %v2894_v18 }
  0x89   : > { %2398 = vmatprep.subr.mxu0 %v2753_v0  ;;  %2431 = vmatprep.subr.mxu1 %v2753_v0 }
  0x8a   : > { %2399 = vmatpush3.msra.mxu0 %v469_v40  ;;  %2432 = vmatpush3.msra.mxu1 %v2910_v26 }
  0x8b   : > { %2400 = vmatprep.subr.mxu0 %v2753_v0  ;;  %2433 = vmatprep.subr.mxu1 %v2753_v0 }
  0x8c   : > { %2401 = vmatpush3.msra.mxu0 %v476_v47  ;;  %2434 = vmatpush3.msra.mxu1 %v2915_v29 }
  0x8d   : > { %2402 = vmatprep.subr.mxu0 %v2753_v0  ;;  %2435 = vmatprep.subr.mxu1 %v2753_v0 }
  0x8e   : > { %2403 = vmatpush3.msra.mxu0 %v483_v55  ;;  %2436 = vmatpush3.msra.mxu1 %v2941_v38 }
  0x8f   : > { %2404 = vmatprep.subr.mxu0 %v2753_v0  ;;  %2437 = vmatprep.subr.mxu1 %v2753_v0 }
  0x90   : > { %2405 = vmatpush3.msra.mxu0 %v490_v4  ;;  %2438 = vmatpush3.msra.mxu1 %v2961_v48 }
  0x91   : > { %2406 = vmatprep.subr.mxu0 %v2753_v0  ;;  %2439 = vmatprep.subr.mxu1 %v2753_v0 }
  0x92   : > { %2407 = vmatpush3.msra.mxu0 %v497_v15  ;;  %2408 = vmatprep.mubr.msk.f32.mxu0 %vm2754_vm0, %v2753_v0 }
  0x93   : > { %2440 = vmatpush3.msra.mxu1 %v2969_v51  ;;  %2409 = vmatmul.mubr.f32.vlgmr.msra.gmra.mxu0 %v2992_v2 }
  0x94   : > { %2441 = vmatprep.subr.mxu1 %v2753_v0  ;;  %2411 = vmatprep.mubr.msk.f32.mxu0 %vm2754_vm0, %v2753_v0 }
  0x95   : > { %2442 = vmatpush3.msra.mxu1 %v2987_v62  ;;  %2449 = vmatprep.mubr.msk.f32.mxu1 %vm2754_vm0, %v2753_v0 }
  0x96   : > { %2443 = vmatprep.subr.mxu1 %v2753_v0  ;;  %1017 = vperm.xlu0 %2640, %v1006_v5  }
  0x97   : > { %2444 = vmatpush3.msra.mxu1 %v2996_v3  ;;  %2412 = vmatmul.mubr.f32.gmra.mxu0 %v3092_v61 }
  0x98   : > { %2445 = vmatprep.subr.mxu1 %v2753_v0  ;;  %2414 = vmatprep.mubr.msk.f32.mxu0 %vm2754_vm0, %v2753_v0 }
  0x99   : > { %2446 = vmatpush3.msra.mxu1 %v3011_v20  ;;  %1023 = vperm.xlu1 %2641, %v1008_v6  }
  0x9a   : > { %2447 = vmatprep.subr.mxu1 %v2753_v0  ;;  %1026 = vperm.xlu0 %2640, %v1009_v7  }
  0x9b   : > { %2448 = vmatpush3.msra.mxu1 %v3023_v35  ;;  %2415 = vmatmul.mubr.f32.gmra.mxu0 %v3107_v10 }
  0x9c   : > { %2450 = vmatmul.mubr.f32.vlgmr.msra.gmra.mxu1 %v2992_v2 }
  0x9d   : > { %2452 = vmatprep.mubr.msk.f32.mxu1 %vm2754_vm0, %v2753_v0  ;;  %1029 = vperm.xlu1 %2641, %v1010_v11  }
  0x9e   : > { %1032 = vperm.xlu0 %2640, %v1011_v12  }
  0xa0   : > { %2453 = vmatmul.mubr.f32.gmra.mxu1 %v3092_v61 }
  0xa1   : > { %2455 = vmatprep.mubr.msk.f32.mxu1 %vm2754_vm0, %v2753_v0  ;;  %1035 = vperm.xlu1 %2641, %v1012_v13  }
  0xa4   : > { %2456 = vmatmul.mubr.f32.gmra.mxu1 %v3107_v10 }
  0xa5   : > { %v1015_v18 = vpop.permute.xlu0 %1014 }
  0xa6   : > { %vm1037_vm2 = vcmp.eq.s32.totalorder %v3319_v17, %v1015_v18  ;;  %v1021_v40 = vpop.permute.xlu1 %1020 }
  0xa7   : > { %v3323_v19 = vsel %vm1037_vm2, 1.0, %v2753_v0  ;;  %vm1039_vm4 = vcmp.eq.s32.totalorder %v3319_v17, %v1021_v40 }
  0xa8   : > { %v1063_v21 = vsel %vm1061_vm1, %v3323_v19, 0  ;;  %2482 = vmatprep.mubr.msk.f32.mxu1 %vm1061_vm1, %v3323_v19  ;;  %v3345_v10 = vsel %vm1039_vm4, 1.0, %v2753_v0 }
  0xa9   : > { %v3329_v22 = vsub.f32 %v1063_v21, %v1063_v21  ;;  %v1069_v11 = vsel %vm1061_vm1, %v3345_v10, 0 }
  0xab   : > { %v1156_v23 = vand.u32 4294901760, %v3329_v22 }
  0xad   : > { %v1157_v24 = vsub.f32 %v3329_v22, %v1156_v23 }
  0xaf   : > { %v1158_v25 = vand.u32 4294901760, %v1157_v24 }
  0xb1   : > { %2464 = vmatprep.mubr.f32.mxu0 %v1158_v25 }
 0x109   : > { %v365_v26 = vpop.f32.mrf.mxu0 }
 0x10a   : > { %v366_v30 = vadd.f32 %v1993_v28, %v365_v26 }
 0x10b   : > { %v2246_v29 = vpop.f32.mrf.mxu0 }
 0x10c   : > { %v3359_v29 = vsub.f32 %v1069_v11, %v1069_v11 }
 0x110   : > { %v536_v31 = vpop.f32.mrf.mxu1 }
 0x111   : > { %v537_v36 = vadd.f32 %v536_v31, %v366_v30  ;;  %v1018_v47 = vpop.permute.xlu0 %1017 }
 0x112   : > { %v2287_v38 = vpop.f32.mrf.mxu1  ;;  %vm1038_vm3 = vcmp.eq.s32.totalorder %v3319_v17, %v1018_v47 }
 0x113   : > { %v3341_v59 = vsel %vm1038_vm3, 1.0, %v2753_v0 }
 0x114   : > { %v1024_v55 = vpop.permute.xlu1 %1023  ;;  %v1066_v44 = vsel %vm1061_vm1, %v3341_v59, 0 }
 0x115   : > { %vm1040_vm5 = vcmp.eq.s32.totalorder %v3319_v17, %v1024_v55  ;;  %v1027_v8 = vpop.permute.xlu0 %1026  ;;  %v3354_v16 = vsub.f32 %v1066_v44, %v1066_v44 }
 0x116   : > { %v3350_v5 = vsel %vm1040_vm5, 1.0, %v2753_v0  ;;  %vm1041_vm6 = vcmp.eq.s32.totalorder %v3319_v17, %v1027_v8 }
 0x117   : > { %v1072_v25 = vsel %vm1061_vm1, %v3350_v5, 0  ;;  %v1166_v38 = vand.u32 4294901760, %v3354_v16 }
 0x118   : > { %v1030_v53 = vpop.permute.xlu1 %1029 }
 0x119   : > { %v1033_v26 = vpop.permute.xlu0 %1032  ;;  %vm1042_vm7 = vcmp.eq.s32.totalorder %v3319_v17, %v1030_v53 }
 0x11a   : > { %vm1043_vm8 = vcmp.eq.s32.totalorder %v3319_v17, %v1033_v26 }
 0x121   : > { %v375_v43 = vpop.f32.mrf.mxu0 }
 0x122   : > { %v376_v41 = vadd.f32 %v1993_v28, %v375_v43 }
 0x123   : > { %v2249_v46 = vpop.f32.mrf.mxu0 }
 0x124   : > { %v3363_v46 = vsub.f32 %v1072_v25, %v1072_v25 }
 0x126   : > { %v385_v48 = vpop.f32.mrf.mxu0 }
 0x127   : > { %v386_v57 = vadd.f32 %v1993_v28, %v385_v48  ;;  %v3366_v48 = vsel %vm1041_vm6, 1.0, %v2753_v0 }
 0x128   : > { %v2252_v49 = vpop.f32.mrf.mxu0 }
 0x12a   : > { %v542_v50 = vpop.f32.mrf.mxu1 }
 0x12b   : > { %v543_v4 = vadd.f32 %v542_v50, %v376_v41 }
 0x12c   : > { %v652_v51 = vpop.f32.mrf.mxu0  ;;  %v2290_v56 = vpop.f32.mrf.mxu1 }
 0x12d   : > { %v653_v61 = vadd.f32 %v652_v51, %v537_v36  ;;  %v1036_v36 = vpop.permute.xlu1 %1035  ;;  %v3374_v56 = vsel %vm1042_vm7, 1.0, %v2753_v0 }
 0x12e   : > { %v2328_v58 = vpop.f32.mrf.mxu0  ;;  %vm1044_vm9 = vcmp.eq.s32.totalorder %v3319_v17, %v1036_v36 }
 0x130   : > { %v548_v60 = vpop.f32.mrf.mxu1 }
 0x131   : > { %v549_v27 = vadd.f32 %v548_v60, %v386_v57  ;;  %v1176_v60 = vand.u32 4294901760, %v3359_v29 }
 0x132   : > { %v2293_v62 = vpop.f32.mrf.mxu1 }
 0x133   : > { %v659_v1 = vpop.f32.mrf.mxu0  ;;  %v1177_v41 = vsub.f32 %v3359_v29, %v1176_v60 }
 0x134   : > { %v660_v37 = vadd.f32 %v659_v1, %v543_v4 }
 0x135   : > { %v2331_v2 = vpop.f32.mrf.mxu0 }
 0x136   : > { %v1075_v2 = vsel %vm1061_vm1, %v3366_v48, 0 }
 0x138   : > { %v666_v3 = vpop.f32.mrf.mxu0  ;;  %v755_v9 = vpop.f32.mrf.mxu1 }
 0x139   : > { %v756_v39 = vadd.f32 %v755_v9, %v653_v61  ;;  %v667_v18 = vadd.f32 %v666_v3, %v549_v27  ;;  %v3382_v3 = vsel %vm1043_vm8, 1.0, %v2753_v0  ;;  %v1167_v9 = vsub.f32 %v3354_v16, %v1166_v38 }
 0x13a   : > { %v2369_v14 = vpop.f32.mrf.mxu1  ;;  %v2334_v20 = vpop.f32.mrf.mxu0  ;;  %v1081_v40 = vsel %vm1061_vm1, %v3382_v3, 0 }
 0x13b   : > { %v1078_v20 = vsel %vm1061_vm1, %v3374_v56, 0  ;;  %v3412_v57 = vsub.f32 %v1081_v40, %v1081_v40 }
 0x13c   : > { %v3405_v47 = vsub.f32 %v1078_v20, %v1078_v20 }
 0x13e   : > { %v763_v32 = vpop.f32.mrf.mxu1 }
 0x13f   : > { %v764_v6 = vadd.f32 %v763_v32, %v660_v37 }
 0x140   : > { %v2372_v33 = vpop.f32.mrf.mxu1 }
 0x141   : > { %v3393_v33 = vsel %vm1044_vm9, 1.0, %v2753_v0  ;;  %v1168_v0 = vand.u32 4294901760, %v1167_v9 }
 0x142   : > { %v1084_v55 = vsel %vm1061_vm1, %v3393_v33, 0 }
 0x143   : > { %v771_v34 = vpop.f32.mrf.mxu1  ;;  %v3423_v27 = vsub.f32 %v1084_v55, %v1084_v55 }
 0x144   : > { %v772_v30 = vadd.f32 %v771_v34, %v667_v18  ;;  %v1186_v34 = vand.u32 4294901760, %v3363_v46 }
 0x145   : > { %v2375_v35 = vpop.f32.mrf.mxu1 }
 0x146   : > { %v3396_v35 = vsub.f32 %v1075_v2, %v1075_v2 }
 0x148   : > { %v1196_v8 = vand.u32 4294901760, %v3396_v35 }
 0x153   : > { %v890_v45 = vpop.f32.mrf.mxu0 }
 0x154   : > { %v891_v7 = vadd.f32 %v890_v45, %v756_v39 }
 0x155   : > { %v2410_v52 = vpop.f32.mrf.mxu0 }
 0x157   : > { %v896_v15 = vpop.f32.mrf.mxu0 }
 0x158   : > { %v897_v21 = vadd.f32 %v896_v15, %v764_v6  ;;  %v1187_v15 = vsub.f32 %v3363_v46, %v1186_v34  ;;  %v1216_v6 = vand.u32 4294901760, %v3412_v57 }
 0x159   : > { %v2413_v63 = vpop.f32.mrf.mxu0 }
 0x15a   : > { %v1178_v63 = vand.u32 4294901760, %v1177_v41  ;;  %v1188_v53 = vand.u32 4294901760, %v1187_v15 }
 0x15b   : > { %v902_v42 = vpop.f32.mrf.mxu0 }
 0x15c   : > { %v989_v54 = vpop.f32.mrf.mxu1  ;;  %v903_v49 = vadd.f32 %v902_v42, %v772_v30  ;;  %v1206_v42 = vand.u32 4294901760, %v3405_v47 }
 0x15d   : > { %v2416_v12 = vpop.f32.mrf.mxu0  ;;  %v990_v24 = vadd.f32 %v989_v54, %v891_v7  ;;  %v1197_v7 = vsub.f32 %v3396_v35, %v1196_v8 }
 0x15e   : > { %v2451_v13 = vpop.f32.mrf.mxu1  ;;  %v1207_v12 = vsub.f32 %v3405_v47, %v1206_v42 }
 0x15f   : > { %v3369_v50 = vand.u32 4294901760, %v990_v24  ;;  %v1226_v13 = vand.u32 4294901760, %v3423_v27 }
 0x160   : > { %v995_v28 = vpop.f32.mrf.mxu1  ;;  %v1208_v25 = vand.u32 4294901760, %v1207_v12 }
 0x161   : > { %v996_v31 = vadd.f32 %v995_v28, %v897_v21  ;;  %v1276_v17 = vsub.f32 %v990_v24, %v3369_v50  ;;  %v1217_v21 = vsub.f32 %v3412_v57, %v1216_v6  ;;  %v1198_v24 = vand.u32 4294901760, %v1197_v7 }
 0x162   : > { %v2454_v43 = vpop.f32.mrf.mxu1  ;;  %v1227_v26 = vsub.f32 %v3423_v27, %v1226_v13 }
 0x163   : > { %v3371_v51 = vand.u32 4294901760, %v996_v31  ;;  %v3418_v61 = vand.u32 4294901760, %v1276_v17  ;;  %v1218_v28 = vand.u32 4294901760, %v1217_v21 }
 0x164   : > { %v1001_v58 = vpop.f32.mrf.mxu1  ;;  %v1228_v30 = vand.u32 4294901760, %v1227_v26 }
 0x165   : > { %v1269_v62 = vsub.f32 %v996_v31, %v3371_v51  ;;  %v1002_v1 = vadd.f32 %v1001_v58, %v903_v49  ;;  %v1278_v54 = vsub.f32 %v1276_v17, %v3418_v61 }
 0x166   : > { %v2457_v14 = vpop.f32.mrf.mxu1 }
 0x167   : > { %v3390_v32 = vand.u32 4294901760, %v1002_v1  ;;  %v3407_v52 = vand.u32 4294901760, %v1269_v62  ;;  %v1279_v18 = vand.u32 4294901760, %v1278_v54 }
 0x169   : > { %v1262_v45 = vsub.f32 %v1002_v1, %v3390_v32  ;;  %2458 = vmatprep.subr.mxu0 %v3390_v32  ;;  %v1271_v39 = vsub.f32 %v1269_v62, %v3407_v52 }
 0x16a   : > { %2459 = vmatpush3.msra.mxu0 %v3390_v32 }
 0x16b   : > { %2460 = vmatprep.subr.mxu0 %v3371_v51  ;;  %v1263_v4 = vand.u32 4294901760, %v1262_v45  ;;  %v1272_v11 = vand.u32 4294901760, %v1271_v39 }
 0x16c   : > { %2461 = vmatpush3.msra.mxu0 %v3371_v51 }
 0x16d   : > { %2462 = vmatprep.subr.mxu0 %v3369_v50  ;;  %v1264_v37 = vsub.f32 %v1262_v45, %v1263_v4 }
 0x16e   : > { %2463 = vmatpush3.msra.mxu0 %v3369_v50 }
 0x16f   : > { %2465 = vmatmul.mubr.f32.vlgmr.msra.gmra.mxu0 %v1168_v0  ;;  %2494 = vmatprep.subr.mxu0 %v1262_v45  ;;  %v1265_v44 = vand.u32 4294901760, %v1264_v37 }
 0x170   : > { %2495 = vmatpush3.msra.mxu0 %v1262_v45  ;;  %2467 = vmatprep.mubr.f32.mxu0 %v1178_v63 }
 0x171   : > { %2476 = vmatprep.subr.mxu1 %v1265_v44  ;;  %2496 = vmatprep.subr.mxu0 %v1269_v62 }
 0x172   : > { %2477 = vmatpush3.msra.mxu1 %v1265_v44  ;;  %2497 = vmatpush3.msra.mxu0 %v1269_v62 }
 0x173   : > { %2468 = vmatmul.mubr.f32.gmra.mxu0 %v1188_v53  ;;  %2478 = vmatprep.subr.mxu1 %v1272_v11 }
 0x174   : > { %2498 = vmatprep.subr.mxu0 %v1276_v17  ;;  %2479 = vmatpush3.msra.mxu1 %v1272_v11 }
 0x175   : > { %2499 = vmatpush3.msra.mxu0 %v1276_v17  ;;  %2480 = vmatprep.subr.mxu1 %v1279_v18 }
 0x176   : > { %2530 = vmatprep.subr.mxu0 %v1263_v4  ;;  %2470 = vmatprep.mubr.f32.mxu0 %v1198_v24 }
 0x177   : > { %2481 = vmatpush3.msra.mxu1 %v1279_v18  ;;  %2471 = vmatmul.mubr.f32.gmra.mxu0 %v1208_v25 }
 0x178   : > { %2483 = vmatmul.mubr.msk.f32.vlgmr.msra.gmra.mxu1 %vm1061_vm1, %v3341_v59  ;;  %2512 = vmatprep.subr.mxu1 %v3390_v32 }
 0x179   : > { %2473 = vmatprep.mubr.f32.mxu0 %v1218_v28  ;;  %2485 = vmatprep.mubr.msk.f32.mxu1 %vm1061_vm1, %v3345_v10 }
 0x17a   : > { %2513 = vmatpush3.msra.mxu1 %v3390_v32 }
 0x17b   : > { %2514 = vmatprep.subr.mxu1 %v3371_v51  ;;  %2474 = vmatmul.mubr.f32.gmra.mxu0 %v1228_v30 }
 0x17c   : > { %2515 = vmatpush3.msra.mxu1 %v3371_v51  ;;  %2500 = vmatprep.mubr.f32.mxu0 %v3329_v22 }
 0x17d   : > { %2486 = vmatmul.mubr.msk.f32.gmra.mxu1 %vm1061_vm1, %v3350_v5  ;;  %2516 = vmatprep.subr.mxu1 %v3369_v50 }
 0x17e   : > { %2488 = vmatprep.mubr.msk.f32.mxu1 %vm1061_vm1, %v3366_v48  ;;  %2517 = vmatpush3.msra.mxu1 %v3369_v50 }
 0x17f   : > { %2548 = vmatprep.subr.mxu1 %v3390_v32  ;;  %2501 = vmatmul.mubr.f32.vlgmr.msra.gmra.mxu0 %v3354_v16 }
 0x180   : > { %2531 = vmatpush3.msra.mxu0 %v1263_v4  ;;  %2503 = vmatprep.mubr.f32.mxu0 %v3359_v29 }
 0x181   : > { %2489 = vmatmul.mubr.msk.f32.gmra.mxu1 %vm1061_vm1, %v3374_v56  ;;  %2532 = vmatprep.subr.mxu0 %v3407_v52 }
 0x182   : > { %2491 = vmatprep.mubr.msk.f32.mxu1 %vm1061_vm1, %v3382_v3  ;;  %2533 = vmatpush3.msra.mxu0 %v3407_v52 }
 0x183   : > { %2534 = vmatprep.subr.mxu0 %v3418_v61  ;;  %2504 = vmatmul.mubr.f32.gmra.mxu0 %v3363_v46 }
 0x184   : > { %2535 = vmatpush3.msra.mxu0 %v3418_v61  ;;  %2506 = vmatprep.mubr.f32.mxu0 %v3396_v35 }
 0x185   : > { %2492 = vmatmul.mubr.msk.f32.gmra.mxu1 %vm1061_vm1, %v3393_v33 }
 0x186   : > { %2518 = vmatprep.mubr.f32.mxu1 %v1156_v23 }
 0x187   : > { %2507 = vmatmul.mubr.f32.gmra.mxu0 %v3405_v47 }
 0x188   : > { %2509 = vmatprep.mubr.f32.mxu0 %v3412_v57 }
 0x189   : > { %2519 = vmatmul.mubr.f32.vlgmr.msra.gmra.mxu1 %v1166_v38 }
 0x18a   : > { %2549 = vmatpush3.msra.mxu1 %v3390_v32  ;;  %2521 = vmatprep.mubr.f32.mxu1 %v1176_v60 }
 0x18b   : > { %2550 = vmatprep.subr.mxu1 %v3371_v51  ;;  %2510 = vmatmul.mubr.f32.gmra.mxu0 %v3423_v27 }
 0x18c   : > { %2551 = vmatpush3.msra.mxu1 %v3371_v51  ;;  %2536 = vmatprep.mubr.msk.f32.mxu0 %vm1061_vm1, %v3323_v19 }
 0x18d   : > { %2552 = vmatprep.subr.mxu1 %v3369_v50  ;;  %2522 = vmatmul.mubr.f32.gmra.mxu1 %v1186_v34 }
 0x18e   : > { %2553 = vmatpush3.msra.mxu1 %v3369_v50  ;;  %2524 = vmatprep.mubr.f32.mxu1 %v1196_v8 }
 0x18f   : > { %2537 = vmatmul.mubr.msk.f32.vlgmr.msra.gmra.mxu0 %vm1061_vm1, %v3341_v59 }
 0x190   : > { %2539 = vmatprep.mubr.msk.f32.mxu0 %vm1061_vm1, %v3345_v10 }
 0x191   : > { %2525 = vmatmul.mubr.f32.gmra.mxu1 %v1206_v42 }
 0x192   : > { %2527 = vmatprep.mubr.f32.mxu1 %v1216_v6 }
 0x193   : > { %2540 = vmatmul.mubr.msk.f32.gmra.mxu0 %vm1061_vm1, %v3350_v5 }
 0x194   : > { %2542 = vmatprep.mubr.msk.f32.mxu0 %vm1061_vm1, %v3366_v48 }
 0x195   : > { %2528 = vmatmul.mubr.f32.gmra.mxu1 %v1226_v13 }
 0x196   : > { %2554 = vmatprep.mubr.msk.f32.mxu1 %vm1061_vm1, %v3323_v19 }
 0x197   : > { %2543 = vmatmul.mubr.msk.f32.gmra.mxu0 %vm1061_vm1, %v3374_v56 }
 0x198   : > { %2545 = vmatprep.mubr.msk.f32.mxu0 %vm1061_vm1, %v3382_v3 }
 0x199   : > { %2555 = vmatmul.mubr.msk.f32.vlgmr.msra.gmra.mxu1 %vm1061_vm1, %v3341_v59 }
 0x19a   : > { %2557 = vmatprep.mubr.msk.f32.mxu1 %vm1061_vm1, %v3345_v10 }
 0x19b   : > { %2546 = vmatmul.mubr.msk.f32.gmra.mxu0 %vm1061_vm1, %v3393_v33 }
 0x19d   : > { %2558 = vmatmul.mubr.msk.f32.gmra.mxu1 %vm1061_vm1, %v3350_v5 }
 0x19e   : > { %2560 = vmatprep.mubr.msk.f32.mxu1 %vm1061_vm1, %v3366_v48 }
 0x1a1   : > { %2561 = vmatmul.mubr.msk.f32.gmra.mxu1 %vm1061_vm1, %v3374_v56 }
 0x1a2   : > { %2563 = vmatprep.mubr.msk.f32.mxu1 %vm1061_vm1, %v3382_v3 }
 0x1a5   : > { %2564 = vmatmul.mubr.msk.f32.gmra.mxu1 %vm1061_vm1, %v3393_v33 }
 0x22f   : > { %v2466_v19 = vpop.f32.mrf.mxu0 }
 0x231   : > { %v1160_v22 = vpop.f32.mrf.mxu0 }
 0x233   : > { %v2469_v23 = vpop.f32.mrf.mxu0 }
 0x235   : > { %v1180_v59 = vpop.f32.mrf.mxu0 }
 0x237   : > { %v2472_v10 = vpop.f32.mrf.mxu0 }
 0x238   : > { %v2484_v16 = vpop.f32.mrf.mxu1 }
 0x239   : > { %v1200_v29 = vpop.f32.mrf.mxu0  ;;  %v1323_v35 = vadd.f32 %v2484_v16, %v2466_v19 }
 0x23a   : > { %v1316_v5 = vpop.f32.mrf.mxu1 }
 0x23b   : > { %v2475_v31 = vpop.f32.mrf.mxu0  ;;  %v1317_v45 = vadd.f32 %v1316_v5, %v1160_v22 }
 0x23d   : > { %v2487_v36 = vpop.f32.mrf.mxu1  ;;  %v1220_v38 = vpop.f32.mrf.mxu0 }
 0x23e   : > { %v1335_v55 = vadd.f32 %v2487_v36, %v2469_v23 }
 0x23f   : > { %v1328_v43 = vpop.f32.mrf.mxu1  ;;  %v2502_v46 = vpop.f32.mrf.mxu0 }
 0x240   : > { %v1444_v47 = vadd.f32 %v2502_v46, %v1323_v35  ;;  %v1329_v63 = vadd.f32 %v1328_v43, %v1180_v59 }
 0x241   : > { %v2490_v48 = vpop.f32.mrf.mxu1  ;;  %v1436_v49 = vpop.f32.mrf.mxu0 }
 0x242   : > { %v1437_v57 = vadd.f32 %v1436_v49, %v1317_v45  ;;  %v1347_v39 = vadd.f32 %v2490_v48, %v2472_v10 }
 0x243   : > { %v1340_v50 = vpop.f32.mrf.mxu1  ;;  %v2505_v51 = vpop.f32.mrf.mxu0 }
 0x244   : > { %v1458_v8 = vadd.f32 %v2505_v51, %v1335_v55  ;;  %v1341_v7 = vadd.f32 %v1340_v50, %v1200_v29 }
 0x245   : > { %v2493_v56 = vpop.f32.mrf.mxu1  ;;  %v1450_v58 = vpop.f32.mrf.mxu0 }
 0x246   : > { %v1451_v44 = vadd.f32 %v1450_v58, %v1329_v63  ;;  %v1359_v25 = vadd.f32 %v2493_v56, %v2475_v31 }
 0x247   : > { %v1352_v60 = vpop.f32.mrf.mxu1  ;;  %v2508_v62 = vpop.f32.mrf.mxu0 }
 0x248   : > { %v1472_v13 = vadd.f32 %v2508_v62, %v1347_v39  ;;  %v1353_v23 = vadd.f32 %v1352_v60, %v1220_v38 }
 0x249   : > { %v2520_v1 = vpop.f32.mrf.mxu1  ;;  %v1464_v2 = vpop.f32.mrf.mxu0 }
 0x24a   : > { %v1570_v4 = vadd.f32 %v2520_v1, %v1444_v47  ;;  %v1465_v28 = vadd.f32 %v1464_v2, %v1341_v7 }
 0x24b   : > { %v1561_v3 = vpop.f32.mrf.mxu1  ;;  %v2511_v9 = vpop.f32.mrf.mxu0 }
 0x24c   : > { %v1562_v27 = vadd.f32 %v1561_v3, %v1437_v57  ;;  %v1486_v16 = vadd.f32 %v2511_v9, %v1359_v25 }
 0x24d   : > { %v2523_v14 = vpop.f32.mrf.mxu1  ;;  %v1478_v20 = vpop.f32.mrf.mxu0 }
 0x24e   : > { %v1586_v53 = vadd.f32 %v2523_v14, %v1458_v8  ;;  %v1479_v31 = vadd.f32 %v1478_v20, %v1353_v23 }
 0x24f   : > { %v1577_v17 = vpop.f32.mrf.mxu1  ;;  %v2538_v32 = vpop.f32.mrf.mxu0 }
 0x250   : > { %v1704_v37 = vadd.f32 %v2538_v32, %v1570_v4  ;;  %v1578_v18 = vadd.f32 %v1577_v17, %v1451_v44 }
 0x251   : > { %v2526_v33 = vpop.f32.mrf.mxu1  ;;  %v1697_v34 = vpop.f32.mrf.mxu0 }
 0x252   : > { %v1698_v54 = vadd.f32 %v1697_v34, %v1562_v27  ;;  %v1602_v30 = vadd.f32 %v2526_v33, %v1472_v13 }
 0x253   : > { %v1593_v40 = vpop.f32.mrf.mxu1  ;;  %v2541_v41 = vpop.f32.mrf.mxu0 }
 0x254   : > { %v1716_v21 = vadd.f32 %v2541_v41, %v1586_v53  ;;  %v1594_v29 = vadd.f32 %v1593_v40, %v1465_v28 }
 0x255   : > { %v2529_v52 = vpop.f32.mrf.mxu1  ;;  %v1709_v0 = vpop.f32.mrf.mxu0 }
 0x256   : > { %v1710_v19 = vadd.f32 %v1709_v0, %v1578_v18  ;;  %v1618_v46 = vadd.f32 %v2529_v52, %v1486_v16 }
 0x257   : > { %v1609_v15 = vpop.f32.mrf.mxu1  ;;  %v2544_v61 = vpop.f32.mrf.mxu0 }
 0x258   : > { %v1728_v5 = vadd.f32 %v2544_v61, %v1602_v30  ;;  %v1610_v51 = vadd.f32 %v1609_v15, %v1479_v31 }
 0x259   : > { %v2556_v42 = vpop.f32.mrf.mxu1  ;;  %v1721_v11 = vpop.f32.mrf.mxu0 }
 0x25a   : > { %v1820_v6 = vadd.f32 %v2556_v42, %v1704_v37  ;;  %v1722_v48 = vadd.f32 %v1721_v11, %v1594_v29 }
 0x25b   : > { %v1813_v12 = vpop.f32.mrf.mxu1  ;;  %v2547_v59 = vpop.f32.mrf.mxu0 }
 0x25c   : > { %1860 = vst [vmem:[%s3532_s8 + $0x8] sm:$0xff] %v1820_v6  ;;  %v1814_v24 = vadd.f32 %v1813_v12, %v1698_v54  ;;  %v1740_v56 = vadd.f32 %v2547_v59, %v1618_v46 }
 0x25d   : > { %v2559_v26 = vpop.f32.mrf.mxu1  ;;  %v1733_v50 = vpop.f32.mrf.mxu0 }
 0x25e   : > { %1859 = vst [vmem:[%s3532_s8] sm:$0xff] %v1814_v24  ;;  %v1832_v22 = vadd.f32 %v2559_v26, %v1716_v21  ;;  %v1734_v62 = vadd.f32 %v1733_v50, %v1610_v51 }
 0x25f   : > { %v1825_v10 = vpop.f32.mrf.mxu1 }
 0x260   : > { %1862 = vst [vmem:[%s3532_s8 + $0x18] sm:$0xff] %v1832_v22  ;;  %v1826_v36 = vadd.f32 %v1825_v10, %v1710_v19 }
 0x261   : > { %v2562_v43 = vpop.f32.mrf.mxu1 }
 0x262   : > { %1861 = vst [vmem:[%s3532_s8 + $0x10] sm:$0xff] %v1826_v36  ;;  %v1844_v49 = vadd.f32 %v2562_v43, %v1728_v5 }
 0x263   : > { %v1837_v38 = vpop.f32.mrf.mxu1 }
 0x264   : > { %1864 = vst [vmem:[%s3532_s8 + $0x28] sm:$0xff] %v1844_v49  ;;  %v1838_v58 = vadd.f32 %v1837_v38, %v1722_v48 }
 0x265   : > { %v2565_v60 = vpop.f32.mrf.mxu1 }
 0x266   : > { %1863 = vst [vmem:[%s3532_s8 + $0x20] sm:$0xff] %v1838_v58  ;;  %v1856_v1 = vadd.f32 %v2565_v60, %v1740_v56 }
 0x267   : > { %v1849_v2 = vpop.f32.mrf.mxu1 }
 0x268   : > { %1866 = vst [vmem:[%s3532_s8 + $0x38] sm:$0xff] %v1856_v1  ;;  %v1850_v3 = vadd.f32 %v1849_v2, %v1734_v62 }
 0x26a   : > { %1865 = vst [vmem:[%s3532_s8 + $0x30] sm:$0xff] %v1850_v3 }
 0x26b   : > { %2681 = shalt.err (!%p2678_p3)
}
 0x26c   : > { %s2682_s23 = scalar_lea.hbm %s3548_s13, 1024  ;;  %s2686_s28 = scalar_lea.hbm %s3603_s5, 2048 }
 0x26d   : > { %p2683_p5 = scmp.ne.s32.totalorder %s3548_s13, %s2682_s23  ;;  %p2687_p9 = scmp.lt.s32.totalorder %s3548_s13, %s3603_s5 }
 0x26e   : > { %p2688_p10 = scmp.lt.s32.totalorder %s2686_s28, %s2682_s23 }
 0x26f   : > { %p2684_p6 = pnand %p2683_p5, %p2829_p4 }
 0x270   : > { %p2689_p11 = por %p2688_p10, %p2687_p9 }
 0x271   : > { %p2685_p7 = pneg %p2684_p6 }
 0x273   : > { %p2690_p12 = pnand %p2689_p11, %p2685_p7 }
 0x275   : > { %2693 = shalt.err (!%p2690_p12)
}
 0x276   : > { %s2757_s8 = smov 128   ;;  %s2758_s10 = smov 8  }
 0x277   : > { %2571 = dma.vmem_to_hbm [thread:$0]  (%p2829_p4), %s3542_s9, 1024, %s3548_s13, %s3553_s14, %s2757_s8, %s2757_s8, %s2758_s10  }
 0x278 PF: > { %p2583_p13 = scmp.ge.s32.totalorder %s2748_s22, 2  ;;  %s1898_s11 = sand.u32 1, %s2728_s18  }
 0x279   : > { %s1899_s12 = scalar_lea.sflag [#allocation6], %s1898_s11 }
 0x27a   : > { %p2578_p0 = pnand %p2583_p13, %p2836_p8 }
 0x27c   : > { %p2579_p1 = pneg %p2578_p0 }
 0x27e   : > { %2723 = dma.done.wait (%p2579_p1), %s1899_s12, 1024  }
 0x27f   : > { %2725 = vsyncadd (%p2579_p1), %s1899_s12, 4294966272  ;;  %s20_s22 = sadd.s32 1, %s2748_s22   ;;  %s3608_s18 = smov %s2732_s0 }
 0x280   : > { %p17_p2 = scmp.ge.s32.totalorder %s20_s22, 4   ;;  %s3609_s0 = smov %s2736_s19 }
 0x281   : > { %s3610_s19 = smov %s2842_s30  ;;  %s3611_s20 = smov %s2744_s21 }
 0x282   : > { %s3612_s21 = smov %s3614_s25  ;;  %19 = sbr.rel (!%p17_p2) target bundleno = 5 (0x5), region = 79 }
 0x287   :  { %1904 = vsyncpa [#allocation5], 1 }
 0x288   :  { %1906 = vsyncpa [#allocation5 + $0x1], 1 }
 0x289   :  { %1907 = vsyncpa [#allocation6], 1 }
 0x28a   :  { %1909 = vsyncpa [#allocation6 + $0x1], 1 }

</bundles_post_ra>
